<compile_context>
chip_gen: v5e
topology: v5e:2x2
jax: 0.10.0
libtpu: 0.0.40
codegen_flags: <defaults>
</compile_context>

<pallas_src>
import functools

import jax
import jax.numpy as jnp
from jax.experimental import pallas as pl
from jax.experimental.pallas import tpu as pltpu

_INV_SQRT2 = 0.7071067811865476  # 1/sqrt(2), hoisted constant


def _gelu_exact(h):
    # Exact GELU (PyTorch nn.GELU default): 0.5 * x * (1 + erf(x / sqrt(2)))
    return 0.5 * h * (1.0 + jax.lax.erf(h * _INV_SQRT2))


def _ffn_kernel_resident(x_ref, w1_ref, b1_ref, w2_ref, b2_ref, o_ref):
    # Whole hidden dim resident in VMEM: one fused pass, no accumulator.
    h = jnp.dot(x_ref[...], w1_ref[...], preferred_element_type=jnp.float32)
    h = h + b1_ref[...].astype(jnp.float32)
    if w2_ref.dtype == jnp.bfloat16:          # trace-time dtype branch
        h = h.astype(jnp.bfloat16)            # bf16 VPU/EUP path on v6e/v7x
    h = _gelu_exact(h)
    # Dropout(p=0.0) == identity.
    y = jnp.dot(h.astype(w2_ref.dtype), w2_ref[...],
                preferred_element_type=jnp.float32)
    o_ref[...] = (y + b2_ref[...].astype(jnp.float32)).astype(o_ref.dtype)


def _ffn_kernel_tiled(x_ref, w1_ref, b1_ref, w2_ref, b2_ref, o_ref, acc_ref):
    # Hidden dim tiled as inner ("arbitrary") reduction axis, f32 accumulator.
    k = pl.program_id(1)
    h = jnp.dot(x_ref[...], w1_ref[...], preferred_element_type=jnp.float32)
    h = h + b1_ref[...].astype(jnp.float32)
    if w2_ref.dtype == jnp.bfloat16:
        h = h.astype(jnp.bfloat16)
    h = _gelu_exact(h)
    # Dropout(p=0.0) == identity.
    partial = jnp.dot(h.astype(w2_ref.dtype), w2_ref[...],
                      preferred_element_type=jnp.float32)

    @pl.when(k == 0)
    def _():
        acc_ref[...] = partial                # direct store: no zero-fill + add

    @pl.when(k > 0)
    def _():
        acc_ref[...] += partial

    @pl.when(k == pl.num_programs(1) - 1)
    def _():
        o_ref[...] = (acc_ref[...] + b2_ref[...].astype(jnp.float32)).astype(o_ref.dtype)


def _round_up(x, m):
    return ((x + m - 1) // m) * m


def _vmem_budget_bytes():
    """Usable VMEM budget with headroom for compiler-internal scratch."""
    cap = 64 * 1024 * 1024  # conservative default (v7x per-TC VMEM)
    try:
        info = pltpu.get_tpu_info()
        cap = int(getattr(info, "vmem_capacity_bytes", cap)) or cap
    except Exception:
        pass
    # Leave >= 8 MiB (or 1/8 of VMEM) headroom; never request more than 100 MiB.
    return min(cap - max(8 << 20, cap // 8), 100 << 20)


def _pick_hidden_tile(hidden, max_th, fits):
    """Largest lane-dense (multiple-of-128) divisor of `hidden` that is <= max_th
    and fits the VMEM budget (best effort: 128 floor)."""
    if hidden % 128 != 0:
        # TODO(synk): hidden sizes not divisible by 128 keep the full hidden
        # resident per step; pad `hidden` if this ever blows the VMEM budget.
        return hidden
    best = 128
    cand = 128
    top = min(hidden, max(128, max_th))
    while cand <= top:
        if hidden % cand == 0 and fits(cand):
            best = cand
        cand += 128
    return best


@functools.partial(jax.jit, static_argnames=("tm", "force_tiled", "max_hidden_tile"))
def feed_forward(x, w1, b1, w2, b2, *, tm=512, force_tiled=False, max_hidden_tile=None):
    """x: (B, S, dim). Weights follow y = x @ W + b (W transposed vs. torch's
    nn.Linear weight of shape (out, in))."""
    B, S, dim = x.shape
    hidden = w1.shape[1]
    M = B * S
    dsize = x.dtype.itemsize
    budget = _vmem_budget_bytes()

    # ---- row tile -------------------------------------------------------
    tm_eff = max(8, (min(tm, _round_up(M, 8)) // 8) * 8)
    if M > 8:  # keep >= 2 row tiles so both v7x TensorCores get work
        tm_eff = min(tm_eff, _round_up((M + 1) // 2, 8))
    # shrink if x/out/acc tiles alone would eat more than half the budget
    while tm_eff > 8 and tm_eff * dim * (4 * dsize + 4) > budget // 2:
        tm_eff = max(8, (tm_eff // 2 // 8) * 8)
    Mp = _round_up(M, tm_eff)
    n_row_tiles = Mp // tm_eff

    x2d = x.reshape(M, dim)
    if Mp != M:
        # Padded rows are independent tokens computed on zeros; sliced off later.
        x2d = jnp.pad(x2d, ((0, Mp - M), (0, 0)))
    b1_2d = b1.reshape(1, hidden)
    b2_2d = b2.reshape(1, dim)

    # Per-row-tile activation footprint (x + out double-buffered, f32 acc slot).
    act_bytes = 4 * tm_eff * dim * dsize + tm_eff * dim * 4
    # Fully-resident weight footprint (Pallas double-buffers inputs by default).
    resident_w_bytes = 2 * (2 * dim * hidden + hidden + dim) * dsize
    resident = (not force_tiled) and (act_bytes + resident_w_bytes <= budget)

    flops = 4 * M * dim * hidden      # two matmuls (mul + add)
    transcendentals = M * hidden      # erf

    if resident:
        grid = (n_row_tiles,)
        in_specs = [
            pl.BlockSpec((tm_eff, dim), lambda i: (i, 0)),   # x rows
            pl.BlockSpec((dim, hidden), lambda i: (0, 0)),   # W1 (DMA'd once)
            pl.BlockSpec((1, hidden), lambda i: (0, 0)),     # b1
            pl.BlockSpec((hidden, dim), lambda i: (0, 0)),   # W2 (DMA'd once)
            pl.BlockSpec((1, dim), lambda i: (0, 0)),        # b2
        ]
        out_spec = pl.BlockSpec((tm_eff, dim), lambda i: (i, 0))
        scratch = []
        kernel = _ffn_kernel_resident
        semantics = ("parallel",)
        need = act_bytes + resident_w_bytes
        weight_traffic = (2 * dim * hidden + hidden + dim) * dsize          # once
    else:
        th = _pick_hidden_tile(
            hidden, max_hidden_tile or hidden,
            lambda t: act_bytes + 2 * (2 * dim * t + t + dim) * dsize <= budget)
        grid = (n_row_tiles, hidden // th)
        in_specs = [
            pl.BlockSpec((tm_eff, dim), lambda i, k: (i, 0)),  # x rows
            pl.BlockSpec((dim, th), lambda i, k: (0, k)),      # W1 hidden-slice
            pl.BlockSpec((1, th), lambda i, k: (0, k)),        # b1 slice
            pl.BlockSpec((th, dim), lambda i, k: (k, 0)),      # W2 hidden-slice
            pl.BlockSpec((1, dim), lambda i, k: (0, 0)),       # b2
        ]
        out_spec = pl.BlockSpec((tm_eff, dim), lambda i, k: (i, 0))
        scratch = [pltpu.VMEM((tm_eff, dim), jnp.float32)]
        kernel = _ffn_kernel_tiled
        semantics = ("parallel", "arbitrary")
        need = act_bytes + 2 * (2 * dim * th + th + dim) * dsize
        # weights re-streamed once per row tile in this configuration
        weight_traffic = n_row_tiles * (2 * dim * hidden + hidden + dim) * dsize

    vmem_limit = int(min(budget, max(32 << 20, need + need // 4)))
    cost = pl.CostEstimate(
        flops=int(flops),
        transcendentals=int(transcendentals),
        bytes_accessed=int(2 * M * dim * dsize + weight_traffic),
    )

    out2d = pl.pallas_call(
        kernel,
        out_shape=jax.ShapeDtypeStruct((Mp, dim), x.dtype),
        grid_spec=pltpu.PrefetchScalarGridSpec(
            num_scalar_prefetch=0,
            grid=grid,
            in_specs=in_specs,
            out_specs=out_spec,
            scratch_shapes=scratch,
        ),
        compiler_params=pltpu.CompilerParams(
            dimension_semantics=semantics,
            vmem_limit_bytes=vmem_limit,
        ),
        cost_estimate=cost,
    )(x2d, w1, b1_2d, w2, b2_2d)

    if Mp != M:
        out2d = out2d[:M]
    return out2d.reshape(B, S, dim)


def _reference(x, w1, b1, w2, b2):
    h = jnp.einsum("bsd,dh->bsh", x.astype(jnp.float32), w1.astype(jnp.float32))
    h = h + b1.astype(jnp.float32)
    h = 0.5 * h * (1.0 + jax.lax.erf(h / jnp.sqrt(2.0)))
    y = jnp.einsum("bsh,hd->bsd", h, w2.astype(jnp.float32)) + b2.astype(jnp.float32)
    return y.astype(x.dtype)


def _make_params(key, dim, hidden):
    k1, kb1, k2, kb2 = jax.random.split(key, 4)
    lim1 = 1.0 / jnp.sqrt(dim)
    lim2 = 1.0 / jnp.sqrt(hidden)
    w1 = jax.random.uniform(k1, (dim, hidden), minval=-lim1, maxval=lim1, dtype=jnp.float32)
    b1 = jax.random.uniform(kb1, (hidden,), minval=-lim1, maxval=lim1, dtype=jnp.float32)
    w2 = jax.random.uniform(k2, (hidden, dim), minval=-lim2, maxval=lim2, dtype=jnp.float32)
    b2 = jax.random.uniform(kb2, (dim,), minval=-lim2, maxval=lim2, dtype=jnp.float32)
    return w1, b1, w2, b2


if __name__ == "__main__":
    key = jax.random.PRNGKey(0)

    # Case 1: small shapes consistent with the module: batch=2, seq=8, dim=32, hidden=64.
    B, S, dim, hidden = 2, 8, 32, 64
    kx, kp = jax.random.split(key)
    x = jax.random.normal(kx, (B, S, dim), dtype=jnp.float32)
    w1, b1, w2, b2 = _make_params(kp, dim, hidden)

    out = jax.block_until_ready(feed_forward(x, w1, b1, w2, b2))
    ref = _reference(x, w1, b1, w2, b2)
    assert out.shape == (B, S, dim)
    assert jnp.allclose(out, ref, atol=1e-5, rtol=1e-5), "case1 mismatch vs reference"

    # Case 2: row padding (B*S not a tile multiple), resident-weight fast path.
    B2, S2, dim2, hidden2 = 2, 10, 32, 256
    kx2, kp2 = jax.random.split(kp)
    x2 = jax.random.normal(kx2, (B2, S2, dim2), dtype=jnp.float32)
    w1b, b1b, w2b, b2b = _make_params(kp2, dim2, hidden2)

    out2 = jax.block_until_ready(feed_forward(x2, w1b, b1b, w2b, b2b))
    ref2 = _reference(x2, w1b, b1b, w2b, b2b)
    assert out2.shape == (B2, S2, dim2)
    assert jnp.allclose(out2, ref2, atol=1e-4, rtol=1e-4), "case2 mismatch vs reference"

    # Case 3: same inputs, forcing the tiled-hidden fallback path (hidden split
    # into two 128-wide reduction steps through the f32 accumulator).
    out3 = jax.block_until_ready(
        feed_forward(x2, w1b, b1b, w2b, b2b, force_tiled=True, max_hidden_tile=128))
    assert jnp.allclose(out3, ref2, atol=1e-4, rtol=1e-4), "case3 mismatch vs reference"

    print("KERNEL_OK")
</pallas_src>

<mosaic_0001>
module attributes {stable_mosaic.version = 11 : i64} {
  func.func @_ffn_kernel_resident(%arg0: i32, %arg1: memref<8x32xf32, #tpu.memory_space<vmem>>, %arg2: memref<32x64xf32, #tpu.memory_space<vmem>>, %arg3: memref<1x64xf32, #tpu.memory_space<vmem>>, %arg4: memref<64x32xf32, #tpu.memory_space<vmem>>, %arg5: memref<1x32xf32, #tpu.memory_space<vmem>>, %arg6: memref<8x32xf32, #tpu.memory_space<vmem>>) attributes {dimension_semantics = [#tpu.dimension_semantics<parallel>], iteration_bounds = array<i64: 2>, scalar_prefetch = 0 : i64, scratch_operands = 0 : i64, tpu.core_type = #tpu.core_type<tc>, window_params = [{transform_indices = @transform_0, window_bounds = array<i64: 8, 32>}, {pipeline_mode = #tpu.pipeline_mode<synchronous>, transform_indices = @transform_1, window_bounds = array<i64: 32, 64>}, {pipeline_mode = #tpu.pipeline_mode<synchronous>, transform_indices = @transform_2, window_bounds = array<i64: 1, 64>}, {pipeline_mode = #tpu.pipeline_mode<synchronous>, transform_indices = @transform_3, window_bounds = array<i64: 64, 32>}, {pipeline_mode = #tpu.pipeline_mode<synchronous>, transform_indices = @transform_4, window_bounds = array<i64: 1, 32>}, {transform_indices = @transform_5, window_bounds = array<i64: 8, 32>}]} {
    %c0 = arith.constant 0 : index
    %c0_0 = arith.constant 0 : index
    %0 = vector.load %arg1[%c0, %c0_0] : memref<8x32xf32, #tpu.memory_space<vmem>>, vector<8x32xf32>
    %c0_1 = arith.constant 0 : index
    %c0_2 = arith.constant 0 : index
    %1 = vector.load %arg2[%c0_1, %c0_2] : memref<32x64xf32, #tpu.memory_space<vmem>>, vector<32x64xf32>
    %cst = arith.constant dense<0.000000e+00> : vector<8x64xf32>
    %2 = tpu.matmul %0, %1, %cst {dimension_numbers = #tpu.dot_dimension_numbers<[1], [0], [0], [1], [0, 0, 1, 1], [], []>} : vector<8x32xf32>, vector<32x64xf32>, vector<8x64xf32> -> vector<8x64xf32>
    %c0_3 = arith.constant 0 : index
    %c0_4 = arith.constant 0 : index
    %3 = vector.load %arg3[%c0_3, %c0_4] : memref<1x64xf32, #tpu.memory_space<vmem>>, vector<1x64xf32>
    %4 = vector.broadcast %3 : vector<1x64xf32> to vector<8x64xf32>
    %5 = arith.addf %2, %4 : vector<8x64xf32>
    %cst_5 = arith.constant 5.000000e-01 : f32
    %6 = vector.broadcast %cst_5 : f32 to vector<8x64xf32>
    %7 = arith.mulf %6, %5 : vector<8x64xf32>
    %cst_6 = arith.constant 0.707106769 : f32
    %8 = vector.broadcast %cst_6 : f32 to vector<8x64xf32>
    %9 = arith.mulf %5, %8 : vector<8x64xf32>
    %10 = math.erf %9 : vector<8x64xf32>
    %cst_7 = arith.constant 1.000000e+00 : f32
    %11 = vector.broadcast %cst_7 : f32 to vector<8x64xf32>
    %12 = arith.addf %11, %10 : vector<8x64xf32>
    %13 = arith.mulf %7, %12 : vector<8x64xf32>
    %c0_8 = arith.constant 0 : index
    %c0_9 = arith.constant 0 : index
    %14 = vector.load %arg4[%c0_8, %c0_9] : memref<64x32xf32, #tpu.memory_space<vmem>>, vector<64x32xf32>
    %cst_10 = arith.constant dense<0.000000e+00> : vector<8x32xf32>
    %15 = tpu.matmul %13, %14, %cst_10 {dimension_numbers = #tpu.dot_dimension_numbers<[1], [0], [0], [1], [0, 0, 1, 1], [], []>} : vector<8x64xf32>, vector<64x32xf32>, vector<8x32xf32> -> vector<8x32xf32>
    %c0_11 = arith.constant 0 : index
    %c0_12 = arith.constant 0 : index
    %16 = vector.load %arg5[%c0_11, %c0_12] : memref<1x32xf32, #tpu.memory_space<vmem>>, vector<1x32xf32>
    %17 = vector.broadcast %16 : vector<1x32xf32> to vector<8x32xf32>
    %18 = arith.addf %15, %17 : vector<8x32xf32>
    %c0_13 = arith.constant 0 : index
    %c0_14 = arith.constant 0 : index
    %19 = vector.load %arg6[%c0_13, %c0_14] : memref<8x32xf32, #tpu.memory_space<vmem>>, vector<8x32xf32>
    tpu.vector_store %arg6[%c0_13, %c0_14], %18 {strides = array<i32>} : memref<8x32xf32, #tpu.memory_space<vmem>>, vector<8x32xf32>,
    return
  }
  func.func @transform_0(%arg0: i32) -> (i32, i32) {
    %c0_i32 = arith.constant 0 : i32
    %c0_i32_0 = arith.constant 0 : i32
    return %arg0, %c0_i32 : i32, i32
  }
  func.func @transform_1(%arg0: i32) -> (i32, i32) {
    %c0_i32 = arith.constant 0 : i32
    %c0_i32_0 = arith.constant 0 : i32
    %c0_i32_1 = arith.constant 0 : i32
    return %c0_i32, %c0_i32_0 : i32, i32
  }
  func.func @transform_2(%arg0: i32) -> (i32, i32) {
    %c0_i32 = arith.constant 0 : i32
    %c0_i32_0 = arith.constant 0 : i32
    %c0_i32_1 = arith.constant 0 : i32
    return %c0_i32, %c0_i32_0 : i32, i32
  }
  func.func @transform_3(%arg0: i32) -> (i32, i32) {
    %c0_i32 = arith.constant 0 : i32
    %c0_i32_0 = arith.constant 0 : i32
    %c0_i32_1 = arith.constant 0 : i32
    return %c0_i32, %c0_i32_0 : i32, i32
  }
  func.func @transform_4(%arg0: i32) -> (i32, i32) {
    %c0_i32 = arith.constant 0 : i32
    %c0_i32_0 = arith.constant 0 : i32
    %c0_i32_1 = arith.constant 0 : i32
    return %c0_i32, %c0_i32_0 : i32, i32
  }
  func.func @transform_5(%arg0: i32) -> (i32, i32) {
    %c0_i32 = arith.constant 0 : i32
    %c0_i32_0 = arith.constant 0 : i32
    return %arg0, %c0_i32 : i32, i32
  }
}

</mosaic_0001>

<bundles_post_ra>
// kernel: feed_forward.1
= control target key start
LH: loop header
LB: loop body
LE: loop exit
PB: predicated region body
PF: predicated region fallthrough
CT: control target
= control target key end

     0   :  { %10 = vsyncpa [#allocation3], 0  ;;  %s688_s0 = inlined_call_operand.vmem [shape: f32[16,32], index: 0, kind: input, shape index: {}]   ;;  %s689_s1 = inlined_call_operand.vmem [shape: f32[32,64], index: 1, kind: input, shape index: {}]   ;;  %s690_s2 = inlined_call_operand.vmem [shape: f32[1,64], index: 2, kind: input, shape index: {}]   ;;  %s691_s3 = inlined_call_operand.vmem [shape: f32[64,32], index: 3, kind: input, shape index: {}]   ;;  %s692_s4 = inlined_call_operand.vmem [shape: f32[1,32], index: 4, kind: input, shape index: {}]   ;;  %s693_s5 = inlined_call_operand.hbm [shape: f32[16,32], index: 5, kind: output, shape index: {}]  }
   0x1   :  { %12 = vsyncpa [#allocation3 + $0x1], 0  ;;  %s559_s18 = smov 0   ;;  %s561_s19 = smov 0  }
   0x2   :  { %s563_s20 = smov 0   ;;  %s565_s21 = smov 0  }
   0x3 LB: > { %s580_s22 = sadd.s32 4294967295, %s527_s21   ;;  %s409_s23 = sadd.s32 4294967294, %s527_s21   ;;  %s527_s21 = sphi %s565_s21, %s699_s21   ;;  %s523_s20 = sphi %s563_s20, %s698_s20   ;;  %s519_s19 = sphi %s561_s19, %s697_s19   ;;  %s515_s18 = sphi %s559_s18, %s696_s18  }
   0x4   : > { %s584_s24 = sadd.s32 1, %s527_s21   ;;  %s135_s25 = sadd.s32 1, %s523_s20 }
   0x5   : > { %s132_s26 = ssub.s32 %s527_s21, %s584_s24  ;;  %p145_p0 = scmp.ne.s32.totalorder %s523_s20, %s519_s19 }
   0x6   : > { %p133_p1 = scmp.eq.s32.totalorder %s132_s26, 0  ;;  %p146_p2 = scmp.eq.s32.totalorder %s580_s22, 1 }
   0x7   : > { %p151_p3 = scmp.ne.s32.totalorder %s519_s19, %s515_s18  ;;  %p152_p4 = scmp.eq.s32.totalorder %s409_s23, 1 }
   0x8   : > { %s595_s27 = scalar_select %p133_p1, %s523_s20, %s135_s25  }
   0x9   : > { %p597_p5 = por %p146_p2, %p145_p0  ;;  %p601_p6 = por %p152_p4, %p151_p3 }
   0xa   : > { %p412_p7 = scmp.ge.s32.totalorder %s527_s21, 1  ;;  %p189_p8 = scmp.lt.s32.totalorder %s527_s21, 3 }
   0xc   : > { %p190_p9 = pnand %p412_p7, %p189_p8 }
   0xd   : > { %p216_p10 = scmp.lt.s32.totalorder (!%p190_p9), %s580_s22, 1  ;;  %s213_s26 = sand.u32 (!%p190_p9), 1, %s519_s19  }
   0xe   : > { %193 = sbr.rel (%p190_p9) target bundleno = 337 (0x151), region = 40  ;;  %s413_s30 = sshll.u32 (!%p190_p9), %s213_s26, 3 }
   0xf   : > { %s419_s6 = sshll.u32 (!%p190_p9), %s580_s22, 3  ;;  %s215_s12 = scalar_lea.vmem (!%p190_p9), [#allocation2], %s413_s30 }
  0x10   : > { %s345_s9 = scalar_lea.hbm (!%p190_p9), %s693_s5, %s419_s6  ;;  %s347_s13 = sshll.u32 (!%p190_p9), %s215_s12, 4  ;;  %s348_s13 = int_to_ptr.vmem [resolvable:$true] %s347_s13 }
  0x11   : > { %s335_s15 = scalar_lea.sflag (!%p190_p9), [#allocation3], %s213_s26  ;;  %s485_s25 = scalar_lea.hbm (!%p190_p9), %s693_s5, 16 }
  0x13   : > { %v224_v0 = vld [vmem:[%s689_s1 + $0x18] sm:$0xff]  ;;  %v223_v1 = vld [vmem:[%s689_s1 + $0x10] sm:$0xff]  ;;  %v222_v2 = vld [vmem:[%s689_s1 + $0x8] sm:$0xff]  ;;  %s217_s11 = scalar_select %p216_p10, %s580_s22, 1  ;;  %vm229_vm0 = vcmask 261120   ;;  %vm309_vm5 = vcmask 523264  }
  0x14   : > { %245 = vmatpush.msra.mxu0 %v224_v0  ;;  %v221_v3 = vld [vmem:[%s689_s1] sm:$0xff]  ;;  %v304_v11 = vld [vmem:[%s691_s3 + $0x38] sm:$0xff]  ;;  %v303_v14 = vld [vmem:[%s691_s3 + $0x30] sm:$0xff] }
  0x15   : > { %s414_s14 = sshll.u32 %s217_s11, 3  ;;  %v461_v5 = vld [vmem:[%s690_s2] ss:$0 sm:$0xff]  ;;  %321 = vmatpush.msra.mxu1 %v304_v11  ;;  %v302_v17 = vld [vmem:[%s691_s3 + $0x28] sm:$0xff]  ;;  %v300_v21 = vld [vmem:[%s691_s3 + $0x18] sm:$0xff] }
  0x16   : > { %246 = vmatpush.msra.mxu0 %v223_v1  ;;  %s219_s17 = scalar_lea.vmem %s688_s0, %s414_s14  ;;  %v301_v20 = vld [vmem:[%s691_s3 + $0x20] sm:$0xff]  ;;  %v299_v23 = vld [vmem:[%s691_s3 + $0x10] sm:$0xff]  ;;  %v298_v26 = vld [vmem:[%s691_s3 + $0x8] sm:$0xff]  ;;  %s349_s14 = sshll.u32 %s345_s9, 4  ;;  %s350_s14 = int_to_ptr.hbm [resolvable:$true] %s349_s14 }
  0x17   : > { %v220_v4 = vld [vmem:[%s219_s17] sm:$0xff]  ;;  %322 = vmatpush.msra.mxu1 %v303_v14  ;;  %s479_s22 = sshra.s32 %s350_s14, 4  ;;  %s480_s22 = int_to_ptr.hbm [resolvable:$true] %s479_s22 }
  0x18   : > { %247 = vmatpush.msra.mxu0 %v222_v2  ;;  %v297_v28 = vld [vmem:[%s691_s3] sm:$0xff]  ;;  %s481_s16 = scalar_lea.hbm %s480_s22, 8  ;;  %p486_p0 = scmp.lt.s32.totalorder %s480_s22, %s693_s5 }
  0x19   : > { %323 = vmatpush.msra.mxu1 %v302_v17  ;;  %v462_v55 = vld [vmem:[%s692_s4] ss:$0 sm:$0xff]  ;;  %p482_p11 = scmp.ne.s32.totalorder %s480_s22, %s481_s16  ;;  %p487_p1 = scmp.lt.s32.totalorder %s485_s25, %s481_s16 }
  0x1a   : > { %248 = vmatpush.msra.mxu0 %v221_v3 }
  0x1b   : > { %415 = vmatmul.msk.f32.vlgmr.msra.gmra.mxu0 %vm229_vm0, %v220_v4  ;;  %324 = vmatpush.msra.mxu1 %v301_v20  ;;  %p483_p12 = pnand %p482_p11, %p597_p5  ;;  %p488_p2 = por %p487_p1, %p486_p0 }
  0x1d   : > { %325 = vmatpush.msra.mxu1 %v300_v21  ;;  %p484_p13 = pneg %p483_p12 }
  0x1f   : > { %326 = vmatpush.msra.mxu1 %v299_v23  ;;  %p489_p3 = pnand %p488_p2, %p484_p13 }
  0x21   : > { %327 = vmatpush.msra.mxu1 %v298_v26 }
  0x23   : > { %328 = vmatpush.msra.mxu1 %v297_v28 }
  0x98   : > { %v250_v6 = vpop.f32.mrf.mxu0 }
  0x99   : > { %v251_v7 = vadd.f32 %v461_v5, %v250_v6 }
  0x9b   : > { %v254_v8 = vmul.f32 0.70710677, %v251_v7  ;;  %v253_v52 = vmul.f32 0.5, %v251_v7 }
  0x9d   : > { %v255_v9 = vmul.f32 %v254_v8, %v254_v8 }
  0x9f   : > { %v256_v10 = vmin.f32 %v255_v9, 16.0 }
  0xa1   : > { %v257_v12 = vmul.f32 2.1237322e-06, %v256_v10  ;;  %v268_v13 = vmul.f32 3.8918573e-05, %v256_v10 }
  0xa3   : > { %v258_v15 = vadd.f32 0.00028619796, %v257_v12  ;;  %v269_v16 = vadd.f32 0.001143296, %v268_v13 }
  0xa5   : > { %v259_v18 = vmul.f32 %v258_v15, %v256_v10  ;;  %v270_v19 = vmul.f32 %v269_v16, %v256_v10 }
  0xa7   : > { %v271_v22 = vadd.f32 0.014752088, %v270_v19  ;;  %v260_v24 = vadd.f32 0.0036580483, %v259_v18 }
  0xa9   : > { %v272_v25 = vmul.f32 %v271_v22, %v256_v10  ;;  %v261_v29 = vmul.f32 %v260_v24, %v256_v10 }
  0xab   : > { %v273_v27 = vadd.f32 0.112945676, %v272_v25  ;;  %v262_v32 = vadd.f32 0.05243302, %v261_v29 }
  0xad   : > { %v274_v30 = vmul.f32 %v273_v27, %v256_v10  ;;  %v263_v35 = vmul.f32 %v262_v32, %v256_v10 }
  0xaf   : > { %v275_v31 = vadd.f32 0.4994258, %v274_v30  ;;  %v264_v36 = vadd.f32 0.18741608, %v263_v35 }
  0xb1   : > { %v276_v33 = vmul.f32 %v275_v31, %v256_v10  ;;  %v265_v38 = vmul.f32 %v264_v36, %v256_v10 }
  0xb3   : > { %v277_v34 = vadd.f32 1.0, %v276_v33  ;;  %v266_v42 = vadd.f32 1.1283791, %v265_v38 }
  0xb5   : > { %463 = vrcp.f32 %v277_v34  ;;  %v289_v41 = vand.u32 2147483648, %v277_v34  ;;  %v287_v44 = vand.u32 2147483647, %v277_v34  ;;  %vm283_vm2 = vweird.f32 %v277_v34 }
  0xb6   : > { %v267_v47 = vmul.f32 %v266_v42, %v254_v8 }
  0xb7   : > { %v290_v46 = vor.u32 1.1754944e-38, %v289_v41  ;;  %vm288_vm4 = vcmp.eq.f32.partialorder %v287_v44, 8.507059e+37 }
  0xbb   : > { %v464_v37 = vpop.eup %463 }
  0xbc   : > { %v279_v39 = vmul.f32 %v464_v37, %v277_v34  ;;  %vm284_vm1 = vweird.f32 %v464_v37 }
  0xbd   : > { %vm285_vm3 = vmor %vm283_vm2, %vm284_vm1 }
  0xbe   : > { %v280_v40 = vsub.f32 1.0, %v279_v39 }
  0xc0   : > { %v281_v43 = vmul.f32 %v464_v37, %v280_v40 }
  0xc2   : > { %v282_v45 = vadd.f32 %v464_v37, %v281_v43 }
  0xc4   : > { %v286_v48 = vsel %vm285_vm3, %v464_v37, %v282_v45 }
  0xc5   : > { %v291_v49 = vsel %vm288_vm4, %v290_v46, %v286_v48 }
  0xc6   : > { %v292_v50 = vmul.f32 %v291_v49, %v267_v47 }
  0xc8   : > { %v416_v51 = vclamps-f32 %v292_v50, 1.0 }
  0xca   : > { %v295_v53 = vadd.f32 1.0, %v416_v51 }
  0xcc   : > { %v296_v54 = vmul.f32 %v295_v53, %v253_v52 }
  0xce   : > { %417 = vmatmul.msk.f32.vlgmr.msra.gmra.mxu1 %vm309_vm5, %v296_v54 }
 0x14b   : > { %v330_v56 = vpop.f32.mrf.mxu1 }
 0x14c   : > { %v331_v57 = vadd.f32 %v462_v55, %v330_v56 }
 0x14e   : > { %333 = vst.msk [vmem:[%s215_s12] sm:$0xff] %vm229_vm0, %v331_v57 }
 0x14f   : > { %492 = shalt.err (!%p489_p3)
}
 0x150   : > { %422 = dma.vmem_to_hbm [thread:$0]  (%p597_p5), %s348_s13, 128, %s350_s14, %s335_s15  }
 0x151 PF: > { %p428_p4 = scmp.ge.s32.totalorder %s527_s21, 2  ;;  %s361_s26 = sand.u32 1, %s515_s18  }
 0x152   : > { %s362_s7 = scalar_lea.sflag [#allocation3], %s361_s26 }
 0x153   : > { %p425_p7 = pnand %p428_p4, %p601_p6 }
 0x155   : > { %p426_p8 = pneg %p425_p7 }
 0x157   : > { %510 = dma.done.wait (%p426_p8), %s362_s7, 128  }
 0x158   : > { %512 = vsyncadd (%p426_p8), %s362_s7, 4294967168  ;;  %p15_p9 = scmp.ge.s32.totalorder %s584_s24, 4   ;;  %s696_s18 = smov %s519_s19 }
 0x159   : > { %s697_s19 = smov %s523_s20  ;;  %s698_s20 = smov %s595_s27 }
 0x15a   : > { %s699_s21 = smov %s584_s24  ;;  %17 = sbr.rel (!%p15_p9) target bundleno = 3 (0x3), region = 75 }
 0x15f   :  { %368 = vsyncpa [#allocation3], 1 }
 0x160   :  { %370 = vsyncpa [#allocation3 + $0x1], 1 }

</bundles_post_ra>
